<compile_context>
chip_gen: v5e
topology: v5e:2x2
jax: 0.10.0
libtpu: 0.0.40
codegen_flags: <defaults>
</compile_context>

<pallas_src>
import jax
import jax.numpy as jnp
from jax.experimental import pallas as pl
from jax.experimental.pallas import tpu as pltpu


# ---------------------------------------------------------------------------
# Flow layers (parameters initialized deterministically in-script)
# ---------------------------------------------------------------------------
class ActNormLayer:
    is_hub = False  # not a hub layer (not Coupling/ResNetCoupling/MAR)

    def __init__(self, key, dim):
        k1, k2 = jax.random.split(key)
        self.dim = dim
        self.log_scale = 0.1 * jax.random.normal(k1, (1, dim), jnp.float32)
        self.bias = 0.1 * jax.random.normal(k2, (1, dim), jnp.float32)

    # pure-JAX reference forward (used only for the correctness check)
    def ref_forward(self, x, logpx=None, context=None):
        y = x * jnp.exp(self.log_scale) + self.bias
        dlp = jnp.broadcast_to(jnp.sum(self.log_scale), (x.shape[0],))
        if logpx is None:
            logpx = jnp.zeros((x.shape[0],), jnp.float32)
        return y, logpx - dlp


class CouplingLayer:
    is_hub = True  # plays the role of flows.CouplingLayer (hub layer)

    def __init__(self, key, dim, context_dim, hidden):
        d_half = dim // 2
        k1, k2, k3, k4 = jax.random.split(key, 4)
        s1 = 1.0 / jnp.sqrt(jnp.float32(d_half + context_dim))
        s2 = 1.0 / jnp.sqrt(jnp.float32(hidden))
        self.dim = dim
        self.d_half = d_half
        self.params = {
            "w1": s1 * jax.random.normal(k1, (d_half + context_dim, hidden), jnp.float32),
            "b1": 0.01 * jax.random.normal(k2, (1, hidden), jnp.float32),
            "w2": s2 * jax.random.normal(k3, (hidden, dim), jnp.float32),
            "b2": 0.01 * jax.random.normal(k4, (1, dim), jnp.float32),
        }

    def ref_forward(self, x, logpx=None, context=None):
        p = self.params
        xa, xb = x[:, :self.d_half], x[:, self.d_half:]
        h = jnp.maximum(jnp.concatenate([xa, context], axis=1) @ p["w1"] + p["b1"], 0.0)
        out = h @ p["w2"] + p["b2"]
        log_s = jnp.tanh(out[:, :self.d_half])
        t = out[:, self.d_half:]
        y = jnp.concatenate([xa, xb * jnp.exp(log_s) + t], axis=1)
        dlp = jnp.sum(log_s, axis=1)
        if logpx is None:
            logpx = jnp.zeros((x.shape[0],), jnp.float32)
        return y, logpx - dlp


# ---------------------------------------------------------------------------
# Static schedule resolution (exact mirror of the PyTorch while-loop)
# ---------------------------------------------------------------------------
def build_schedule(chains, reverse=False):
    assert not reverse  # TODO(synk): reverse traversal (idx_step=-1) not implemented
    steps = []
    active = 0
    idx = [0, 0]
    idx_end = [len(chains[0]), len(chains[1])]
    while idx != idx_end:
        layer = chains[active][idx[active]]
        # binarize the conditioning state only when chain 1 is the active flow
        steps.append((active, idx[active], layer.is_hub, layer.is_hub and active == 1))
        idx[active] += 1
        if idx[active] == idx_end[active] or chains[active][idx[active]].is_hub:
            active = 1 - active
    return steps


# ---------------------------------------------------------------------------
# Fused Pallas kernel (whole schedule in one kernel body, unrolled at trace time)
# ---------------------------------------------------------------------------
def _make_fused_kernel(param_meta, n_params, has_context):
    def kernel(*refs):
        x1a_ref, x1b_ref, x2a_ref, x2b_ref, lp_ref = refs[:5]
        off = 5
        ctx = None
        if has_context:
            ctx = refs[off][...]
            off += 1
        p = refs[off:off + n_params]
        y1a_ref, y1b_ref, y2a_ref, y2b_ref, lpo_ref = refs[off + n_params:]

        # flow state kept as (first-half, second-half) pairs -> no in-vreg slicing
        state = [
            [x1a_ref[...], x1b_ref[...]],
            [x2a_ref[...], x2b_ref[...]],
        ]
        logpx = lp_ref[...]  # (tile_b, 1)

        for meta in param_meta:
            if meta[0] == "actnorm":
                _, flow, s = meta
                sa, sb, ba, bb, slog = (p[s + k] for k in range(5))
                xa, xb = state[flow]
                state[flow] = [xa * sa[...] + ba[...], xb * sb[...] + bb[...]]
                logpx = logpx - slog[...]  # (1,1) broadcasts over (tile_b,1)
            else:
                _, flow, binarize, s, has_ext = meta
                w1_xa, w1_oa, w1_ob, b1, w2_s, w2_t, b2_s, b2_t = (
                    p[s + k] for k in range(8))
                xa, xb = state[flow]
                oa, ob = state[1 - flow]
                if binarize:
                    oa = jnp.where(oa > 0, 1.0, -1.0)
                    ob = jnp.where(ob > 0, 1.0, -1.0)
                # split-K conditioner matmul (no lane-axis concat of activations)
                h = (jnp.dot(xa, w1_xa[...], preferred_element_type=jnp.float32)
                     + jnp.dot(oa, w1_oa[...], preferred_element_type=jnp.float32)
                     + jnp.dot(ob, w1_ob[...], preferred_element_type=jnp.float32)
                     + b1[...])
                if has_ext:
                    h = h + jnp.dot(ctx, p[s + 8][...],
                                    preferred_element_type=jnp.float32)
                h = jnp.maximum(h, 0.0)
                log_s = jnp.tanh(
                    jnp.dot(h, w2_s[...], preferred_element_type=jnp.float32) + b2_s[...])
                t = jnp.dot(h, w2_t[...], preferred_element_type=jnp.float32) + b2_t[...]
                state[flow] = [xa, xb * jnp.exp(log_s) + t]
                logpx = logpx - jnp.sum(log_s, axis=1, keepdims=True)

        y1a_ref[...], y1b_ref[...] = state[0]
        y2a_ref[...], y2b_ref[...] = state[1]
        # lane-dense logpx store (avoid masked width-1 partial store)
        lpo_ref[...] = jnp.broadcast_to(logpx, lpo_ref.shape)

    return kernel


def coupling_sequential_forward(chains, x1, x2, logpx=None, context=None, reverse=False):
    assert not reverse  # TODO(synk): reverse (inverse) pass not implemented
    B, D1 = x1.shape
    _, D2 = x2.shape
    d = (D1, D2)
    dh = (D1 // 2, D2 // 2)
    has_context = context is not None
    ctx_dim = context.shape[1] if has_context else 0

    steps = build_schedule(chains, reverse=reverse)

    # one-time state split (cheap XLA slices, outside the kernel)
    x1a, x1b = x1[:, :dh[0]], x1[:, dh[0]:]
    x2a, x2b = x2[:, :dh[1]], x2[:, dh[1]:]
    if logpx is None:
        lp0 = jnp.zeros((B, 1), jnp.float32)
    else:
        lp0 = jnp.asarray(logpx, jnp.float32).reshape(B, 1)

    # flatten / pre-split parameters once (exp, sum, matmul row/col splits)
    params = []
    meta = []
    for flow, li, is_hub, binarize in steps:
        layer = chains[flow][li]
        if not is_hub:
            h0 = dh[flow]
            scale = jnp.exp(layer.log_scale)
            s = len(params)
            params += [scale[:, :h0], scale[:, h0:],
                       layer.bias[:, :h0], layer.bias[:, h0:],
                       jnp.sum(layer.log_scale).reshape(1, 1)]
            meta.append(("actnorm", flow, s))
        else:
            h0 = dh[flow]
            oh = dh[1 - flow]
            od = d[1 - flow]
            pr = layer.params
            w1, b1, w2, b2 = pr["w1"], pr["b1"], pr["w2"], pr["b2"]
            s = len(params)
            plist = [w1[:h0], w1[h0:h0 + oh], w1[h0 + oh:h0 + od], b1,
                     w2[:, :h0], w2[:, h0:], b2[:, :h0], b2[:, h0:]]
            if has_context:
                plist.append(w1[h0 + od:])
            params += plist
            meta.append(("coupling", flow, binarize, s, has_context))

    n_params = len(params)
    kernel = _make_fused_kernel(tuple(meta), n_params, has_context)

    # batch tiling: weights stay resident (constant index_map); batch axis parallel
    tile_b = B if B <= 512 else 512
    grid = (pl.cdiv(B, tile_b),)

    def batch_spec(ncols):
        return pl.BlockSpec((tile_b, ncols), lambda i: (i, 0))

    def resident_spec(shape):
        return pl.BlockSpec(shape, lambda i: (0,) * len(shape))

    in_specs = [batch_spec(dh[0]), batch_spec(dh[0]),
                batch_spec(dh[1]), batch_spec(dh[1]),
                batch_spec(1)]
    inputs = [x1a, x1b, x2a, x2b, lp0]
    if has_context:
        in_specs.append(batch_spec(ctx_dim))
        inputs.append(context)
    in_specs += [resident_spec(pa.shape) for pa in params]
    inputs += params

    out_specs = [batch_spec(dh[0]), batch_spec(dh[0]),
                 batch_spec(dh[1]), batch_spec(dh[1]),
                 batch_spec(128)]
    out_shape = [jax.ShapeDtypeStruct((B, dh[0]), jnp.float32),
                 jax.ShapeDtypeStruct((B, dh[0]), jnp.float32),
                 jax.ShapeDtypeStruct((B, dh[1]), jnp.float32),
                 jax.ShapeDtypeStruct((B, dh[1]), jnp.float32),
                 jax.ShapeDtypeStruct((B, 128), jnp.float32)]

    y1a, y1b, y2a, y2b, lp = pl.pallas_call(
        kernel,
        grid=grid,
        in_specs=in_specs,
        out_specs=out_specs,
        out_shape=out_shape,
        compiler_params=pltpu.CompilerParams(dimension_semantics=("parallel",)),
    )(*inputs)

    y1 = jnp.concatenate([y1a, y1b], axis=1)
    y2 = jnp.concatenate([y2a, y2b], axis=1)
    return y1, y2, lp[:, 0]


# ---------------------------------------------------------------------------
# Pure-JAX reference of the identical schedule / math (sanity check only)
# ---------------------------------------------------------------------------
def coupling_sequential_forward_ref(chains, x1, x2, logpx=None, context=None):
    x = [x1, x2]
    active = 0
    idx = [0, 0]
    idx_end = [len(chains[0]), len(chains[1])]
    while idx != idx_end:
        layer = chains[active][idx[active]]
        if not layer.is_hub:
            x[active], logpx = layer.ref_forward(x[active], logpx=logpx, context=context)
        else:
            other = x[1 - active]
            if active == 1:
                other = (other > 0).astype(jnp.float32) * 2.0 - 1.0
            full_ctx = other if context is None else jnp.concatenate((other, context), axis=1)
            x[active], logpx = layer.ref_forward(x[active], logpx=logpx, context=full_ctx)
        idx[active] += 1
        if idx[active] == idx_end[active] or chains[active][idx[active]].is_hub:
            active = 1 - active
    return x[0], x[1], logpx


# ---------------------------------------------------------------------------
if __name__ == "__main__":
    key = jax.random.PRNGKey(0)
    B, D1, D2, H = 8, 8, 8, 32
    ks = jax.random.split(key, 8)

    # chain 1: non-hub ActNorm, then hub coupling layer conditioned on x2
    chain1 = [ActNormLayer(ks[0], D1), CouplingLayer(ks[1], D1, D2, H)]
    # chain 2: hub coupling layer conditioned on binarized x1, then ActNorm
    chain2 = [CouplingLayer(ks[2], D2, D1, H), ActNormLayer(ks[3], D2)]
    chains = [chain1, chain2]

    x1 = jax.random.normal(ks[4], (B, D1), jnp.float32)
    x2 = jax.random.normal(ks[5], (B, D2), jnp.float32)

    fused = jax.jit(lambda a, b: coupling_sequential_forward(chains, a, b))
    y1, y2, logpx = fused(x1, x2)
    jax.block_until_ready((y1, y2, logpx))

    r1, r2, rlog = coupling_sequential_forward_ref(chains, x1, x2)
    assert jnp.allclose(y1, r1, atol=1e-4, rtol=1e-4)
    assert jnp.allclose(y2, r2, atol=1e-4, rtol=1e-4)
    assert jnp.allclose(logpx, rlog, atol=1e-4, rtol=1e-4)

    print("KERNEL_OK")
</pallas_src>

<mosaic_0001>
module attributes {stable_mosaic.version = 11 : i64} {
  func.func @kernel(%arg0: i32, %arg1: memref<8x4xf32, #tpu.memory_space<vmem>>, %arg2: memref<8x4xf32, #tpu.memory_space<vmem>>, %arg3: memref<8x4xf32, #tpu.memory_space<vmem>>, %arg4: memref<8x4xf32, #tpu.memory_space<vmem>>, %arg5: memref<8x1xf32, #tpu.memory_space<vmem>>, %arg6: memref<1x4xf32, #tpu.memory_space<vmem>>, %arg7: memref<1x4xf32, #tpu.memory_space<vmem>>, %arg8: memref<1x4xf32, #tpu.memory_space<vmem>>, %arg9: memref<1x4xf32, #tpu.memory_space<vmem>>, %arg10: memref<1x1xf32, #tpu.memory_space<vmem>>, %arg11: memref<4x32xf32, #tpu.memory_space<vmem>>, %arg12: memref<4x32xf32, #tpu.memory_space<vmem>>, %arg13: memref<4x32xf32, #tpu.memory_space<vmem>>, %arg14: memref<1x32xf32, #tpu.memory_space<vmem>>, %arg15: memref<32x4xf32, #tpu.memory_space<vmem>>, %arg16: memref<32x4xf32, #tpu.memory_space<vmem>>, %arg17: memref<1x4xf32, #tpu.memory_space<vmem>>, %arg18: memref<1x4xf32, #tpu.memory_space<vmem>>, %arg19: memref<1x4xf32, #tpu.memory_space<vmem>>, %arg20: memref<1x4xf32, #tpu.memory_space<vmem>>, %arg21: memref<1x4xf32, #tpu.memory_space<vmem>>, %arg22: memref<1x4xf32, #tpu.memory_space<vmem>>, %arg23: memref<1x1xf32, #tpu.memory_space<vmem>>, %arg24: memref<4x32xf32, #tpu.memory_space<vmem>>, %arg25: memref<4x32xf32, #tpu.memory_space<vmem>>, %arg26: memref<4x32xf32, #tpu.memory_space<vmem>>, %arg27: memref<1x32xf32, #tpu.memory_space<vmem>>, %arg28: memref<32x4xf32, #tpu.memory_space<vmem>>, %arg29: memref<32x4xf32, #tpu.memory_space<vmem>>, %arg30: memref<1x4xf32, #tpu.memory_space<vmem>>, %arg31: memref<1x4xf32, #tpu.memory_space<vmem>>, %arg32: memref<8x4xf32, #tpu.memory_space<vmem>>, %arg33: memref<8x4xf32, #tpu.memory_space<vmem>>, %arg34: memref<8x4xf32, #tpu.memory_space<vmem>>, %arg35: memref<8x4xf32, #tpu.memory_space<vmem>>, %arg36: memref<8x128xf32, #tpu.memory_space<vmem>>) attributes {dimension_semantics = [#tpu.dimension_semantics<parallel>], iteration_bounds = array<i64: 1>, scalar_prefetch = 0 : i64, scratch_operands = 0 : i64, tpu.core_type = #tpu.core_type<tc>, window_params = [{transform_indices = @transform_0, window_bounds = array<i64: 8, 4>}, {transform_indices = @transform_1, window_bounds = array<i64: 8, 4>}, {transform_indices = @transform_2, window_bounds = array<i64: 8, 4>}, {transform_indices = @transform_3, window_bounds = array<i64: 8, 4>}, {transform_indices = @transform_4, window_bounds = array<i64: 8, 1>}, {pipeline_mode = #tpu.pipeline_mode<synchronous>, transform_indices = @transform_5, window_bounds = array<i64: 1, 4>}, {pipeline_mode = #tpu.pipeline_mode<synchronous>, transform_indices = @transform_6, window_bounds = array<i64: 1, 4>}, {pipeline_mode = #tpu.pipeline_mode<synchronous>, transform_indices = @transform_7, window_bounds = array<i64: 1, 4>}, {pipeline_mode = #tpu.pipeline_mode<synchronous>, transform_indices = @transform_8, window_bounds = array<i64: 1, 4>}, {pipeline_mode = #tpu.pipeline_mode<synchronous>, transform_indices = @transform_9, window_bounds = array<i64: 1, 1>}, {pipeline_mode = #tpu.pipeline_mode<synchronous>, transform_indices = @transform_10, window_bounds = array<i64: 4, 32>}, {pipeline_mode = #tpu.pipeline_mode<synchronous>, transform_indices = @transform_11, window_bounds = array<i64: 4, 32>}, {pipeline_mode = #tpu.pipeline_mode<synchronous>, transform_indices = @transform_12, window_bounds = array<i64: 4, 32>}, {pipeline_mode = #tpu.pipeline_mode<synchronous>, transform_indices = @transform_13, window_bounds = array<i64: 1, 32>}, {pipeline_mode = #tpu.pipeline_mode<synchronous>, transform_indices = @transform_14, window_bounds = array<i64: 32, 4>}, {pipeline_mode = #tpu.pipeline_mode<synchronous>, transform_indices = @transform_15, window_bounds = array<i64: 32, 4>}, {pipeline_mode = #tpu.pipeline_mode<synchronous>, transform_indices = @transform_16, window_bounds = array<i64: 1, 4>}, {pipeline_mode = #tpu.pipeline_mode<synchronous>, transform_indices = @transform_17, window_bounds = array<i64: 1, 4>}, {pipeline_mode = #tpu.pipeline_mode<synchronous>, transform_indices = @transform_18, window_bounds = array<i64: 1, 4>}, {pipeline_mode = #tpu.pipeline_mode<synchronous>, transform_indices = @transform_19, window_bounds = array<i64: 1, 4>}, {pipeline_mode = #tpu.pipeline_mode<synchronous>, transform_indices = @transform_20, window_bounds = array<i64: 1, 4>}, {pipeline_mode = #tpu.pipeline_mode<synchronous>, transform_indices = @transform_21, window_bounds = array<i64: 1, 4>}, {pipeline_mode = #tpu.pipeline_mode<synchronous>, transform_indices = @transform_22, window_bounds = array<i64: 1, 1>}, {pipeline_mode = #tpu.pipeline_mode<synchronous>, transform_indices = @transform_23, window_bounds = array<i64: 4, 32>}, {pipeline_mode = #tpu.pipeline_mode<synchronous>, transform_indices = @transform_24, window_bounds = array<i64: 4, 32>}, {pipeline_mode = #tpu.pipeline_mode<synchronous>, transform_indices = @transform_25, window_bounds = array<i64: 4, 32>}, {pipeline_mode = #tpu.pipeline_mode<synchronous>, transform_indices = @transform_26, window_bounds = array<i64: 1, 32>}, {pipeline_mode = #tpu.pipeline_mode<synchronous>, transform_indices = @transform_27, window_bounds = array<i64: 32, 4>}, {pipeline_mode = #tpu.pipeline_mode<synchronous>, transform_indices = @transform_28, window_bounds = array<i64: 32, 4>}, {pipeline_mode = #tpu.pipeline_mode<synchronous>, transform_indices = @transform_29, window_bounds = array<i64: 1, 4>}, {pipeline_mode = #tpu.pipeline_mode<synchronous>, transform_indices = @transform_30, window_bounds = array<i64: 1, 4>}, {transform_indices = @transform_31, window_bounds = array<i64: 8, 4>}, {transform_indices = @transform_32, window_bounds = array<i64: 8, 4>}, {transform_indices = @transform_33, window_bounds = array<i64: 8, 4>}, {transform_indices = @transform_34, window_bounds = array<i64: 8, 4>}, {transform_indices = @transform_35, window_bounds = array<i64: 8, 128>}]} {
    %c0 = arith.constant 0 : index
    %c0_0 = arith.constant 0 : index
    %0 = vector.load %arg1[%c0, %c0_0] : memref<8x4xf32, #tpu.memory_space<vmem>>, vector<8x4xf32>
    %c0_1 = arith.constant 0 : index
    %c0_2 = arith.constant 0 : index
    %1 = vector.load %arg2[%c0_1, %c0_2] : memref<8x4xf32, #tpu.memory_space<vmem>>, vector<8x4xf32>
    %c0_3 = arith.constant 0 : index
    %c0_4 = arith.constant 0 : index
    %2 = vector.load %arg3[%c0_3, %c0_4] : memref<8x4xf32, #tpu.memory_space<vmem>>, vector<8x4xf32>
    %c0_5 = arith.constant 0 : index
    %c0_6 = arith.constant 0 : index
    %3 = vector.load %arg4[%c0_5, %c0_6] : memref<8x4xf32, #tpu.memory_space<vmem>>, vector<8x4xf32>
    %c0_7 = arith.constant 0 : index
    %c0_8 = arith.constant 0 : index
    %4 = vector.load %arg5[%c0_7, %c0_8] : memref<8x1xf32, #tpu.memory_space<vmem>>, vector<8x1xf32>
    %c0_9 = arith.constant 0 : index
    %c0_10 = arith.constant 0 : index
    %5 = vector.load %arg6[%c0_9, %c0_10] : memref<1x4xf32, #tpu.memory_space<vmem>>, vector<1x4xf32>
    %6 = vector.broadcast %5 : vector<1x4xf32> to vector<8x4xf32>
    %7 = arith.mulf %0, %6 : vector<8x4xf32>
    %c0_11 = arith.constant 0 : index
    %c0_12 = arith.constant 0 : index
    %8 = vector.load %arg8[%c0_11, %c0_12] : memref<1x4xf32, #tpu.memory_space<vmem>>, vector<1x4xf32>
    %9 = vector.broadcast %8 : vector<1x4xf32> to vector<8x4xf32>
    %10 = arith.addf %7, %9 : vector<8x4xf32>
    %c0_13 = arith.constant 0 : index
    %c0_14 = arith.constant 0 : index
    %11 = vector.load %arg7[%c0_13, %c0_14] : memref<1x4xf32, #tpu.memory_space<vmem>>, vector<1x4xf32>
    %12 = vector.broadcast %11 : vector<1x4xf32> to vector<8x4xf32>
    %13 = arith.mulf %1, %12 : vector<8x4xf32>
    %c0_15 = arith.constant 0 : index
    %c0_16 = arith.constant 0 : index
    %14 = vector.load %arg9[%c0_15, %c0_16] : memref<1x4xf32, #tpu.memory_space<vmem>>, vector<1x4xf32>
    %15 = vector.broadcast %14 : vector<1x4xf32> to vector<8x4xf32>
    %16 = arith.addf %13, %15 : vector<8x4xf32>
    %c0_17 = arith.constant 0 : index
    %c0_18 = arith.constant 0 : index
    %17 = vector.load %arg10[%c0_17, %c0_18] : memref<1x1xf32, #tpu.memory_space<vmem>>, vector<1x1xf32>
    %18 = vector.broadcast %17 : vector<1x1xf32> to vector<8x1xf32>
    %19 = arith.subf %4, %18 : vector<8x1xf32>
    %cst = arith.constant 0.000000e+00 : f32
    %20 = vector.broadcast %cst : f32 to vector<8x4xf32>
    %21 = arith.cmpf ogt, %10, %20 : vector<8x4xf32>
    %cst_19 = arith.constant 1.000000e+00 : f32
    %cst_20 = arith.constant -1.000000e+00 : f32
    %22 = vector.broadcast %cst_19 : f32 to vector<8x4xf32>
    %23 = vector.broadcast %cst_20 : f32 to vector<8x4xf32>
    %24 = arith.select %21, %22, %23 : vector<8x4xi1>, vector<8x4xf32>
    %cst_21 = arith.constant 0.000000e+00 : f32
    %25 = vector.broadcast %cst_21 : f32 to vector<8x4xf32>
    %26 = arith.cmpf ogt, %16, %25 : vector<8x4xf32>
    %cst_22 = arith.constant 1.000000e+00 : f32
    %cst_23 = arith.constant -1.000000e+00 : f32
    %27 = vector.broadcast %cst_22 : f32 to vector<8x4xf32>
    %28 = vector.broadcast %cst_23 : f32 to vector<8x4xf32>
    %29 = arith.select %26, %27, %28 : vector<8x4xi1>, vector<8x4xf32>
    %c0_24 = arith.constant 0 : index
    %c0_25 = arith.constant 0 : index
    %30 = vector.load %arg11[%c0_24, %c0_25] : memref<4x32xf32, #tpu.memory_space<vmem>>, vector<4x32xf32>
    %cst_26 = arith.constant dense<0.000000e+00> : vector<8x32xf32>
    %31 = tpu.matmul %2, %30, %cst_26 {dimension_numbers = #tpu.dot_dimension_numbers<[1], [0], [0], [1], [0, 0, 1, 1], [], []>} : vector<8x4xf32>, vector<4x32xf32>, vector<8x32xf32> -> vector<8x32xf32>
    %c0_27 = arith.constant 0 : index
    %c0_28 = arith.constant 0 : index
    %32 = vector.load %arg12[%c0_27, %c0_28] : memref<4x32xf32, #tpu.memory_space<vmem>>, vector<4x32xf32>
    %cst_29 = arith.constant dense<0.000000e+00> : vector<8x32xf32>
    %33 = tpu.matmul %24, %32, %cst_29 {dimension_numbers = #tpu.dot_dimension_numbers<[1], [0], [0], [1], [0, 0, 1, 1], [], []>} : vector<8x4xf32>, vector<4x32xf32>, vector<8x32xf32> -> vector<8x32xf32>
    %34 = arith.addf %31, %33 : vector<8x32xf32>
    %c0_30 = arith.constant 0 : index
    %c0_31 = arith.constant 0 : index
    %35 = vector.load %arg13[%c0_30, %c0_31] : memref<4x32xf32, #tpu.memory_space<vmem>>, vector<4x32xf32>
    %cst_32 = arith.constant dense<0.000000e+00> : vector<8x32xf32>
    %36 = tpu.matmul %29, %35, %cst_32 {dimension_numbers = #tpu.dot_dimension_numbers<[1], [0], [0], [1], [0, 0, 1, 1], [], []>} : vector<8x4xf32>, vector<4x32xf32>, vector<8x32xf32> -> vector<8x32xf32>
    %37 = arith.addf %34, %36 : vector<8x32xf32>
    %c0_33 = arith.constant 0 : index
    %c0_34 = arith.constant 0 : index
    %38 = vector.load %arg14[%c0_33, %c0_34] : memref<1x32xf32, #tpu.memory_space<vmem>>, vector<1x32xf32>
    %39 = vector.broadcast %38 : vector<1x32xf32> to vector<8x32xf32>
    %40 = arith.addf %37, %39 : vector<8x32xf32>
    %cst_35 = arith.constant 0.000000e+00 : f32
    %41 = vector.broadcast %cst_35 : f32 to vector<8x32xf32>
    %42 = arith.maximumf %40, %41 : vector<8x32xf32>
    %c0_36 = arith.constant 0 : index
    %c0_37 = arith.constant 0 : index
    %43 = vector.load %arg15[%c0_36, %c0_37] : memref<32x4xf32, #tpu.memory_space<vmem>>, vector<32x4xf32>
    %cst_38 = arith.constant dense<0.000000e+00> : vector<8x4xf32>
    %44 = tpu.matmul %42, %43, %cst_38 {dimension_numbers = #tpu.dot_dimension_numbers<[1], [0], [0], [1], [0, 0, 1, 1], [], []>} : vector<8x32xf32>, vector<32x4xf32>, vector<8x4xf32> -> vector<8x4xf32>
    %c0_39 = arith.constant 0 : index
    %c0_40 = arith.constant 0 : index
    %45 = vector.load %arg17[%c0_39, %c0_40] : memref<1x4xf32, #tpu.memory_space<vmem>>, vector<1x4xf32>
    %46 = vector.broadcast %45 : vector<1x4xf32> to vector<8x4xf32>
    %47 = arith.addf %44, %46 : vector<8x4xf32>
    %48 = math.tanh %47 : vector<8x4xf32>
    %c0_41 = arith.constant 0 : index
    %c0_42 = arith.constant 0 : index
    %49 = vector.load %arg16[%c0_41, %c0_42] : memref<32x4xf32, #tpu.memory_space<vmem>>, vector<32x4xf32>
    %cst_43 = arith.constant dense<0.000000e+00> : vector<8x4xf32>
    %50 = tpu.matmul %42, %49, %cst_43 {dimension_numbers = #tpu.dot_dimension_numbers<[1], [0], [0], [1], [0, 0, 1, 1], [], []>} : vector<8x32xf32>, vector<32x4xf32>, vector<8x4xf32> -> vector<8x4xf32>
    %c0_44 = arith.constant 0 : index
    %c0_45 = arith.constant 0 : index
    %51 = vector.load %arg18[%c0_44, %c0_45] : memref<1x4xf32, #tpu.memory_space<vmem>>, vector<1x4xf32>
    %52 = vector.broadcast %51 : vector<1x4xf32> to vector<8x4xf32>
    %53 = arith.addf %50, %52 : vector<8x4xf32>
    %54 = math.exp %48 : vector<8x4xf32>
    %55 = arith.mulf %3, %54 : vector<8x4xf32>
    %56 = arith.addf %55, %53 : vector<8x4xf32>
    %cst_46 = arith.constant dense<0.000000e+00> : vector<8xf32>
    %57 = vector.multi_reduction <add>, %48, %cst_46 [1] : vector<8x4xf32> to vector<8xf32>
    %58 = vector.shape_cast %57 : vector<8xf32> to vector<8x1xf32>
    %59 = arith.subf %19, %58 : vector<8x1xf32>
    %c0_47 = arith.constant 0 : index
    %c0_48 = arith.constant 0 : index
    %60 = vector.load %arg19[%c0_47, %c0_48] : memref<1x4xf32, #tpu.memory_space<vmem>>, vector<1x4xf32>
    %61 = vector.broadcast %60 : vector<1x4xf32> to vector<8x4xf32>
    %62 = arith.mulf %2, %61 : vector<8x4xf32>
    %c0_49 = arith.constant 0 : index
    %c0_50 = arith.constant 0 : index
    %63 = vector.load %arg21[%c0_49, %c0_50] : memref<1x4xf32, #tpu.memory_space<vmem>>, vector<1x4xf32>
    %64 = vector.broadcast %63 : vector<1x4xf32> to vector<8x4xf32>
    %65 = arith.addf %62, %64 : vector<8x4xf32>
    %c0_51 = arith.constant 0 : index
    %c0_52 = arith.constant 0 : index
    %66 = vector.load %arg20[%c0_51, %c0_52] : memref<1x4xf32, #tpu.memory_space<vmem>>, vector<1x4xf32>
    %67 = vector.broadcast %66 : vector<1x4xf32> to vector<8x4xf32>
    %68 = arith.mulf %56, %67 : vector<8x4xf32>
    %c0_53 = arith.constant 0 : index
    %c0_54 = arith.constant 0 : index
    %69 = vector.load %arg22[%c0_53, %c0_54] : memref<1x4xf32, #tpu.memory_space<vmem>>, vector<1x4xf32>
    %70 = vector.broadcast %69 : vector<1x4xf32> to vector<8x4xf32>
    %71 = arith.addf %68, %70 : vector<8x4xf32>
    %c0_55 = arith.constant 0 : index
    %c0_56 = arith.constant 0 : index
    %72 = vector.load %arg23[%c0_55, %c0_56] : memref<1x1xf32, #tpu.memory_space<vmem>>, vector<1x1xf32>
    %73 = vector.broadcast %72 : vector<1x1xf32> to vector<8x1xf32>
    %74 = arith.subf %59, %73 : vector<8x1xf32>
    %c0_57 = arith.constant 0 : index
    %c0_58 = arith.constant 0 : index
    %75 = vector.load %arg24[%c0_57, %c0_58] : memref<4x32xf32, #tpu.memory_space<vmem>>, vector<4x32xf32>
    %cst_59 = arith.constant dense<0.000000e+00> : vector<8x32xf32>
    %76 = tpu.matmul %10, %75, %cst_59 {dimension_numbers = #tpu.dot_dimension_numbers<[1], [0], [0], [1], [0, 0, 1, 1], [], []>} : vector<8x4xf32>, vector<4x32xf32>, vector<8x32xf32> -> vector<8x32xf32>
    %c0_60 = arith.constant 0 : index
    %c0_61 = arith.constant 0 : index
    %77 = vector.load %arg25[%c0_60, %c0_61] : memref<4x32xf32, #tpu.memory_space<vmem>>, vector<4x32xf32>
    %cst_62 = arith.constant dense<0.000000e+00> : vector<8x32xf32>
    %78 = tpu.matmul %65, %77, %cst_62 {dimension_numbers = #tpu.dot_dimension_numbers<[1], [0], [0], [1], [0, 0, 1, 1], [], []>} : vector<8x4xf32>, vector<4x32xf32>, vector<8x32xf32> -> vector<8x32xf32>
    %79 = arith.addf %76, %78 : vector<8x32xf32>
    %c0_63 = arith.constant 0 : index
    %c0_64 = arith.constant 0 : index
    %80 = vector.load %arg26[%c0_63, %c0_64] : memref<4x32xf32, #tpu.memory_space<vmem>>, vector<4x32xf32>
    %cst_65 = arith.constant dense<0.000000e+00> : vector<8x32xf32>
    %81 = tpu.matmul %71, %80, %cst_65 {dimension_numbers = #tpu.dot_dimension_numbers<[1], [0], [0], [1], [0, 0, 1, 1], [], []>} : vector<8x4xf32>, vector<4x32xf32>, vector<8x32xf32> -> vector<8x32xf32>
    %82 = arith.addf %79, %81 : vector<8x32xf32>
    %c0_66 = arith.constant 0 : index
    %c0_67 = arith.constant 0 : index
    %83 = vector.load %arg27[%c0_66, %c0_67] : memref<1x32xf32, #tpu.memory_space<vmem>>, vector<1x32xf32>
    %84 = vector.broadcast %83 : vector<1x32xf32> to vector<8x32xf32>
    %85 = arith.addf %82, %84 : vector<8x32xf32>
    %cst_68 = arith.constant 0.000000e+00 : f32
    %86 = vector.broadcast %cst_68 : f32 to vector<8x32xf32>
    %87 = arith.maximumf %85, %86 : vector<8x32xf32>
    %c0_69 = arith.constant 0 : index
    %c0_70 = arith.constant 0 : index
    %88 = vector.load %arg28[%c0_69, %c0_70] : memref<32x4xf32, #tpu.memory_space<vmem>>, vector<32x4xf32>
    %cst_71 = arith.constant dense<0.000000e+00> : vector<8x4xf32>
    %89 = tpu.matmul %87, %88, %cst_71 {dimension_numbers = #tpu.dot_dimension_numbers<[1], [0], [0], [1], [0, 0, 1, 1], [], []>} : vector<8x32xf32>, vector<32x4xf32>, vector<8x4xf32> -> vector<8x4xf32>
    %c0_72 = arith.constant 0 : index
    %c0_73 = arith.constant 0 : index
    %90 = vector.load %arg30[%c0_72, %c0_73] : memref<1x4xf32, #tpu.memory_space<vmem>>, vector<1x4xf32>
    %91 = vector.broadcast %90 : vector<1x4xf32> to vector<8x4xf32>
    %92 = arith.addf %89, %91 : vector<8x4xf32>
    %93 = math.tanh %92 : vector<8x4xf32>
    %c0_74 = arith.constant 0 : index
    %c0_75 = arith.constant 0 : index
    %94 = vector.load %arg29[%c0_74, %c0_75] : memref<32x4xf32, #tpu.memory_space<vmem>>, vector<32x4xf32>
    %cst_76 = arith.constant dense<0.000000e+00> : vector<8x4xf32>
    %95 = tpu.matmul %87, %94, %cst_76 {dimension_numbers = #tpu.dot_dimension_numbers<[1], [0], [0], [1], [0, 0, 1, 1], [], []>} : vector<8x32xf32>, vector<32x4xf32>, vector<8x4xf32> -> vector<8x4xf32>
    %c0_77 = arith.constant 0 : index
    %c0_78 = arith.constant 0 : index
    %96 = vector.load %arg31[%c0_77, %c0_78] : memref<1x4xf32, #tpu.memory_space<vmem>>, vector<1x4xf32>
    %97 = vector.broadcast %96 : vector<1x4xf32> to vector<8x4xf32>
    %98 = arith.addf %95, %97 : vector<8x4xf32>
    %99 = math.exp %93 : vector<8x4xf32>
    %100 = arith.mulf %16, %99 : vector<8x4xf32>
    %101 = arith.addf %100, %98 : vector<8x4xf32>
    %cst_79 = arith.constant dense<0.000000e+00> : vector<8xf32>
    %102 = vector.multi_reduction <add>, %93, %cst_79 [1] : vector<8x4xf32> to vector<8xf32>
    %103 = vector.shape_cast %102 : vector<8xf32> to vector<8x1xf32>
    %104 = arith.subf %74, %103 : vector<8x1xf32>
    %c0_80 = arith.constant 0 : index
    %c0_81 = arith.constant 0 : index
    %105 = vector.load %arg32[%c0_80, %c0_81] : memref<8x4xf32, #tpu.memory_space<vmem>>, vector<8x4xf32>
    tpu.vector_store %arg32[%c0_80, %c0_81], %10 {strides = array<i32>} : memref<8x4xf32, #tpu.memory_space<vmem>>, vector<8x4xf32>,
    %c0_82 = arith.constant 0 : index
    %c0_83 = arith.constant 0 : index
    %106 = vector.load %arg33[%c0_82, %c0_83] : memref<8x4xf32, #tpu.memory_space<vmem>>, vector<8x4xf32>
    tpu.vector_store %arg33[%c0_82, %c0_83], %101 {strides = array<i32>} : memref<8x4xf32, #tpu.memory_space<vmem>>, vector<8x4xf32>,
    %c0_84 = arith.constant 0 : index
    %c0_85 = arith.constant 0 : index
    %107 = vector.load %arg34[%c0_84, %c0_85] : memref<8x4xf32, #tpu.memory_space<vmem>>, vector<8x4xf32>
    tpu.vector_store %arg34[%c0_84, %c0_85], %65 {strides = array<i32>} : memref<8x4xf32, #tpu.memory_space<vmem>>, vector<8x4xf32>,
    %c0_86 = arith.constant 0 : index
    %c0_87 = arith.constant 0 : index
    %108 = vector.load %arg35[%c0_86, %c0_87] : memref<8x4xf32, #tpu.memory_space<vmem>>, vector<8x4xf32>
    tpu.vector_store %arg35[%c0_86, %c0_87], %71 {strides = array<i32>} : memref<8x4xf32, #tpu.memory_space<vmem>>, vector<8x4xf32>,
    %109 = vector.shape_cast %104 : vector<8x1xf32> to vector<8x1xf32>
    %110 = vector.broadcast %109 : vector<8x1xf32> to vector<8x128xf32>
    %c0_88 = arith.constant 0 : index
    %c0_89 = arith.constant 0 : index
    %111 = vector.load %arg36[%c0_88, %c0_89] : memref<8x128xf32, #tpu.memory_space<vmem>>, vector<8x128xf32>
    tpu.vector_store %arg36[%c0_88, %c0_89], %110 {strides = array<i32>} : memref<8x128xf32, #tpu.memory_space<vmem>>, vector<8x128xf32>,
    return
  }
  func.func @transform_0(%arg0: i32) -> (i32, i32) {
    %c0_i32 = arith.constant 0 : i32
    %c0_i32_0 = arith.constant 0 : i32
    return %arg0, %c0_i32 : i32, i32
  }
  func.func @transform_1(%arg0: i32) -> (i32, i32) {
    %c0_i32 = arith.constant 0 : i32
    %c0_i32_0 = arith.constant 0 : i32
    return %arg0, %c0_i32 : i32, i32
  }
  func.func @transform_2(%arg0: i32) -> (i32, i32) {
    %c0_i32 = arith.constant 0 : i32
    %c0_i32_0 = arith.constant 0 : i32
    return %arg0, %c0_i32 : i32, i32
  }
  func.func @transform_3(%arg0: i32) -> (i32, i32) {
    %c0_i32 = arith.constant 0 : i32
    %c0_i32_0 = arith.constant 0 : i32
    return %arg0, %c0_i32 : i32, i32
  }
  func.func @transform_4(%arg0: i32) -> (i32, i32) {
    %c0_i32 = arith.constant 0 : i32
    %c0_i32_0 = arith.constant 0 : i32
    return %arg0, %c0_i32 : i32, i32
  }
  func.func @transform_5(%arg0: i32) -> (i32, i32) {
    %c0_i32 = arith.constant 0 : i32
    %c0_i32_0 = arith.constant 0 : i32
    %c0_i32_1 = arith.constant 0 : i32
    return %c0_i32, %c0_i32_0 : i32, i32
  }
  func.func @transform_6(%arg0: i32) -> (i32, i32) {
    %c0_i32 = arith.constant 0 : i32
    %c0_i32_0 = arith.constant 0 : i32
    %c0_i32_1 = arith.constant 0 : i32
    return %c0_i32, %c0_i32_0 : i32, i32
  }
  func.func @transform_7(%arg0: i32) -> (i32, i32) {
    %c0_i32 = arith.constant 0 : i32
    %c0_i32_0 = arith.constant 0 : i32
    %c0_i32_1 = arith.constant 0 : i32
    return %c0_i32, %c0_i32_0 : i32, i32
  }
  func.func @transform_8(%arg0: i32) -> (i32, i32) {
    %c0_i32 = arith.constant 0 : i32
    %c0_i32_0 = arith.constant 0 : i32
    %c0_i32_1 = arith.constant 0 : i32
    return %c0_i32, %c0_i32_0 : i32, i32
  }
  func.func @transform_9(%arg0: i32) -> (i32, i32) {
    %c0_i32 = arith.constant 0 : i32
    %c0_i32_0 = arith.constant 0 : i32
    %c0_i32_1 = arith.constant 0 : i32
    return %c0_i32, %c0_i32_0 : i32, i32
  }
  func.func @transform_10(%arg0: i32) -> (i32, i32) {
    %c0_i32 = arith.constant 0 : i32
    %c0_i32_0 = arith.constant 0 : i32
    %c0_i32_1 = arith.constant 0 : i32
    return %c0_i32, %c0_i32_0 : i32, i32
  }
  func.func @transform_11(%arg0: i32) -> (i32, i32) {
    %c0_i32 = arith.constant 0 : i32
    %c0_i32_0 = arith.constant 0 : i32
    %c0_i32_1 = arith.constant 0 : i32
    return %c0_i32, %c0_i32_0 : i32, i32
  }
  func.func @transform_12(%arg0: i32) -> (i32, i32) {
    %c0_i32 = arith.constant 0 : i32
    %c0_i32_0 = arith.constant 0 : i32
    %c0_i32_1 = arith.constant 0 : i32
    return %c0_i32, %c0_i32_0 : i32, i32
  }
  func.func @transform_13(%arg0: i32) -> (i32, i32) {
    %c0_i32 = arith.constant 0 : i32
    %c0_i32_0 = arith.constant 0 : i32
    %c0_i32_1 = arith.constant 0 : i32
    return %c0_i32, %c0_i32_0 : i32, i32
  }
  func.func @transform_14(%arg0: i32) -> (i32, i32) {
    %c0_i32 = arith.constant 0 : i32
    %c0_i32_0 = arith.constant 0 : i32
    %c0_i32_1 = arith.constant 0 : i32
    return %c0_i32, %c0_i32_0 : i32, i32
  }
  func.func @transform_15(%arg0: i32) -> (i32, i32) {
    %c0_i32 = arith.constant 0 : i32
    %c0_i32_0 = arith.constant 0 : i32
    %c0_i32_1 = arith.constant 0 : i32
    return %c0_i32, %c0_i32_0 : i32, i32
  }
  func.func @transform_16(%arg0: i32) -> (i32, i32) {
    %c0_i32 = arith.constant 0 : i32
    %c0_i32_0 = arith.constant 0 : i32
    %c0_i32_1 = arith.constant 0 : i32
    return %c0_i32, %c0_i32_0 : i32, i32
  }
  func.func @transform_17(%arg0: i32) -> (i32, i32) {
    %c0_i32 = arith.constant 0 : i32
    %c0_i32_0 = arith.constant 0 : i32
    %c0_i32_1 = arith.constant 0 : i32
    return %c0_i32, %c0_i32_0 : i32, i32
  }
  func.func @transform_18(%arg0: i32) -> (i32, i32) {
    %c0_i32 = arith.constant 0 : i32
    %c0_i32_0 = arith.constant 0 : i32
    %c0_i32_1 = arith.constant 0 : i32
    return %c0_i32, %c0_i32_0 : i32, i32
  }
  func.func @transform_19(%arg0: i32) -> (i32, i32) {
    %c0_i32 = arith.constant 0 : i32
    %c0_i32_0 = arith.constant 0 : i32
    %c0_i32_1 = arith.constant 0 : i32
    return %c0_i32, %c0_i32_0 : i32, i32
  }
  func.func @transform_20(%arg0: i32) -> (i32, i32) {
    %c0_i32 = arith.constant 0 : i32
    %c0_i32_0 = arith.constant 0 : i32
    %c0_i32_1 = arith.constant 0 : i32
    return %c0_i32, %c0_i32_0 : i32, i32
  }
  func.func @transform_21(%arg0: i32) -> (i32, i32) {
    %c0_i32 = arith.constant 0 : i32
    %c0_i32_0 = arith.constant 0 : i32
    %c0_i32_1 = arith.constant 0 : i32
    return %c0_i32, %c0_i32_0 : i32, i32
  }
  func.func @transform_22(%arg0: i32) -> (i32, i32) {
    %c0_i32 = arith.constant 0 : i32
    %c0_i32_0 = arith.constant 0 : i32
    %c0_i32_1 = arith.constant 0 : i32
    return %c0_i32, %c0_i32_0 : i32, i32
  }
  func.func @transform_23(%arg0: i32) -> (i32, i32) {
    %c0_i32 = arith.constant 0 : i32
    %c0_i32_0 = arith.constant 0 : i32
    %c0_i32_1 = arith.constant 0 : i32
    return %c0_i32, %c0_i32_0 : i32, i32
  }
  func.func @transform_24(%arg0: i32) -> (i32, i32) {
    %c0_i32 = arith.constant 0 : i32
    %c0_i32_0 = arith.constant 0 : i32
    %c0_i32_1 = arith.constant 0 : i32
    return %c0_i32, %c0_i32_0 : i32, i32
  }
  func.func @transform_25(%arg0: i32) -> (i32, i32) {
    %c0_i32 = arith.constant 0 : i32
    %c0_i32_0 = arith.constant 0 : i32
    %c0_i32_1 = arith.constant 0 : i32
    return %c0_i32, %c0_i32_0 : i32, i32
  }
  func.func @transform_26(%arg0: i32) -> (i32, i32) {
    %c0_i32 = arith.constant 0 : i32
    %c0_i32_0 = arith.constant 0 : i32
    %c0_i32_1 = arith.constant 0 : i32
    return %c0_i32, %c0_i32_0 : i32, i32
  }
  func.func @transform_27(%arg0: i32) -> (i32, i32) {
    %c0_i32 = arith.constant 0 : i32
    %c0_i32_0 = arith.constant 0 : i32
    %c0_i32_1 = arith.constant 0 : i32
    return %c0_i32, %c0_i32_0 : i32, i32
  }
  func.func @transform_28(%arg0: i32) -> (i32, i32) {
    %c0_i32 = arith.constant 0 : i32
    %c0_i32_0 = arith.constant 0 : i32
    %c0_i32_1 = arith.constant 0 : i32
    return %c0_i32, %c0_i32_0 : i32, i32
  }
  func.func @transform_29(%arg0: i32) -> (i32, i32) {
    %c0_i32 = arith.constant 0 : i32
    %c0_i32_0 = arith.constant 0 : i32
    %c0_i32_1 = arith.constant 0 : i32
    return %c0_i32, %c0_i32_0 : i32, i32
  }
  func.func @transform_30(%arg0: i32) -> (i32, i32) {
    %c0_i32 = arith.constant 0 : i32
    %c0_i32_0 = arith.constant 0 : i32
    %c0_i32_1 = arith.constant 0 : i32
    return %c0_i32, %c0_i32_0 : i32, i32
  }
  func.func @transform_31(%arg0: i32) -> (i32, i32) {
    %c0_i32 = arith.constant 0 : i32
    %c0_i32_0 = arith.constant 0 : i32
    return %arg0, %c0_i32 : i32, i32
  }
  func.func @transform_32(%arg0: i32) -> (i32, i32) {
    %c0_i32 = arith.constant 0 : i32
    %c0_i32_0 = arith.constant 0 : i32
    return %arg0, %c0_i32 : i32, i32
  }
  func.func @transform_33(%arg0: i32) -> (i32, i32) {
    %c0_i32 = arith.constant 0 : i32
    %c0_i32_0 = arith.constant 0 : i32
    return %arg0, %c0_i32 : i32, i32
  }
  func.func @transform_34(%arg0: i32) -> (i32, i32) {
    %c0_i32 = arith.constant 0 : i32
    %c0_i32_0 = arith.constant 0 : i32
    return %arg0, %c0_i32 : i32, i32
  }
  func.func @transform_35(%arg0: i32) -> (i32, i32) {
    %c0_i32 = arith.constant 0 : i32
    %c0_i32_0 = arith.constant 0 : i32
    return %arg0, %c0_i32 : i32, i32
  }
}

</mosaic_0001>

<bundles_post_ra>
// kernel: _lambda_.1
= control target key start
LH: loop header
LB: loop body
LE: loop exit
PB: predicated region body
PF: predicated region fallthrough
CT: control target
= control target key end

     0   :  { %s1151_s6 = smov 1   ;;  %s1152_s10 = smov 2   ;;  %s1483_s0 = inlined_call_operand.smem [shape: u32[36], index: -1, kind: input, shape index: {}] }
   0x1   :  { %s1210_s5 = sld [smem:[%s1483_s0]]   ;;  %s1153_s14 = smov 3  }
   0x2   :  { %s1215_s9 = sld [smem:[%s1483_s0 + %s1151_s6]]   ;;  %s1154_s18 = smov 4  }
   0x3   :  { %s1220_s13 = sld [smem:[%s1483_s0 + %s1152_s10]]   ;;  %s1155_s22 = smov 5  }
   0x4   :  { %s1225_s17 = sld [smem:[%s1483_s0 + %s1153_s14]]   ;;  %s1156_s26 = smov 6  }
   0x5   :  { %s1230_s21 = sld [smem:[%s1483_s0 + %s1154_s18]]   ;;  %s1157_s30 = smov 7  }
   0x6   :  { %s1235_s25 = sld [smem:[%s1483_s0 + %s1155_s22]]   ;;  %s1158_s4 = smov 8  }
   0x7   :  { %1486 = sst [smem:[#allocation30_spill]] %s1210_s5  ;;  %s1159_s10 = smov 9  }
   0x8   :  { %s1240_s29 = sld [smem:[%s1483_s0 + %s1156_s26]]   ;;  %s1160_s15 = smov 10  }
   0x9   :  { %1487 = sst [smem:[#allocation31_spill]] %s1220_s13  ;;  %s1161_s20 = smov 11  }
   0xa   :  { %1488 = sst [smem:[#allocation32_spill]] %s1225_s17  ;;  %s1162_s26 = smov 12  }
   0xb   :  { %1489 = sst [smem:[#allocation33_spill]] %s1230_s21  ;;  %s1163_s1 = smov 13  }
   0xc   :  { %1490 = sst [smem:[#allocation34_spill]] %s1235_s25  ;;  %s1164_s7 = smov 14  }
   0xd   :  { %s1245_s3 = sld [smem:[%s1483_s0 + %s1157_s30]]   ;;  %s1166_s22 = smov 16  }
   0xe   :  { %1491 = sst [smem:[#allocation35_spill]] %s1240_s29  ;;  %s1167_s28 = smov 17  }
   0xf   :  { %s1250_s8 = sld [smem:[%s1483_s0 + %s1158_s4]]   ;;  %s1174_s21 = smov 25  }
  0x10   :  { %s729_s14 = sld [smem:[%s1483_s0 + %s1159_s10]]  }
  0x11   :  { %s1258_s19 = sld [smem:[%s1483_s0 + %s1160_s15]]   ;;  %s1165_s15 = smov 15  }
  0x12   :  { %s1263_s24 = sld [smem:[%s1483_s0 + %s1161_s20]]  }
  0x13   :  { %1492 = sst [smem:[#allocation36_spill]] %s1245_s3 }
  0x14   :  { %s1268_s30 = sld [smem:[%s1483_s0 + %s1162_s26]]  }
  0x15   :  { %1493 = sst [smem:[#allocation37_spill]] %s1250_s8 }
  0x16   :  { %s1273_s6 = sld [smem:[%s1483_s0 + %s1163_s1]]   ;;  %v77_v0 = vstv %s729_s14  ;;  %s1169_s14 = smov 19  }
  0x17   :  { %1494 = sst [smem:[#allocation38_spill]] %s1258_s19  ;;  %78 = vst [vmem:[#allocation2] sm:$0x1] %v77_v0 }
  0x18   :  { %1495 = sst [smem:[#allocation39_spill]] %s1263_s24 }
  0x19   :  { %s1278_s12 = sld [smem:[%s1483_s0 + %s1164_s7]]   ;;  %s1168_s7 = smov 18  }
  0x1a   :  { %s1283_s20 = sld [smem:[%s1483_s0 + %s1165_s15]]  }
  0x1b   :  { %s1288_s27 = sld [smem:[%s1483_s0 + %s1166_s22]]   ;;  %s1170_s22 = smov 20  }
  0x1c   :  { %1496 = sst [smem:[#allocation40_spill]] %s1273_s6 }
  0x1d   :  { %s1293_s4 = sld [smem:[%s1483_s0 + %s1167_s28]]   ;;  %s1171_s28 = smov 21  }
  0x1e   :  { %s1298_s15 = sld [smem:[%s1483_s0 + %s1168_s7]]   ;;  %s1172_s7 = smov 23  }
  0x1f   :  { %1497 = sst [smem:[#allocation41_spill]] %s1278_s12 }
  0x20   :  { %1498 = sst [smem:[#allocation42_spill]] %s1283_s20 }
  0x21   :  { %1499 = sst [smem:[#allocation43_spill]] %s1288_s27 }
  0x22   :  { %s1303_s23 = sld [smem:[%s1483_s0 + %s1169_s14]]   ;;  %s1173_s14 = smov 24  }
  0x23   :  { %s1308_s17 = sld [smem:[%s1483_s0 + %s1170_s22]]  }
  0x24   :  { %s1313_s27 = sld [smem:[%s1483_s0 + %s1171_s28]]   ;;  %s1175_s28 = smov 26  }
  0x25   :  { %s1318_s6 = sld [smem:[%s1483_s0 + %s1172_s7]]   ;;  %s1176_s7 = smov 27  }
  0x26   :  { %s1323_s20 = sld [smem:[%s1483_s0 + %s1173_s14]]   ;;  %s1177_s14 = smov 28  }
  0x27   :  { %s1328_s12 = sld [smem:[%s1483_s0 + %s1174_s21]]   ;;  %s1178_s21 = smov 29  }
  0x28   :  { %s1333_s13 = sld [smem:[%s1483_s0 + %s1175_s28]]   ;;  %s1179_s28 = smov 30  }
  0x29   :  { %s1338_s3 = sld [smem:[%s1483_s0 + %s1176_s7]]   ;;  %s1180_s7 = smov 31  }
  0x2a   :  { %s1343_s25 = sld [smem:[%s1483_s0 + %s1177_s14]]   ;;  %s1181_s14 = smov 32  }
  0x2b   :  { %s1348_s5 = sld [smem:[%s1483_s0 + %s1178_s21]]   ;;  %s1182_s21 = smov 33  }
  0x2c   :  { %s1358_s19 = sld [smem:[%s1483_s0 + %s1180_s7]]   ;;  %s1184_s7 = smov 35  }
  0x2d   :  { %s1363_s24 = sld [smem:[%s1483_s0 + %s1181_s14]]   ;;  %s1185_s14 = smov 22  }
  0x2e   :  { %1500 = sst [smem:[#allocation44_spill]] %s1333_s13 }
  0x2f   :  { %s1353_s13 = sld [smem:[%s1483_s0 + %s1179_s28]]   ;;  %s1183_s28 = smov 34  }
  0x30   :  { %s1368_s8 = sld [smem:[%s1483_s0 + %s1182_s21]]  }
  0x31   :  { %s1373_s29 = sld [smem:[%s1483_s0 + %s1183_s28]]  }
  0x32   :  { %1501 = sst [smem:[#allocation45_spill]] %s1358_s19 }
  0x33   :  { %1502 = sst [smem:[#allocation46_spill]] %s1363_s24 }
  0x34   :  { %s1378_s19 = sld [smem:[%s1483_s0 + %s1184_s7]]  }
  0x35   :  { %s742_s24 = sld [smem:[%s1483_s0 + %s1185_s14]]  }
  0x3b   :  { %v79_v1 = vstv %s742_s24 }
  0x3c   :  { %80 = vst [vmem:[#allocation3] sm:$0x1] %v79_v1 }
  0x3d   :  { %81 = vsyncpa [#allocation5], 0 }
  0x3e   :  { %82 = vsyncpa [#allocation7], 0 }
  0x3f   :  { %83 = vsyncpa [#allocation10], 0 }
  0x40   :  { %84 = vsyncpa [#allocation13], 0 }
  0x41   :  { %85 = vsyncpa [#allocation16], 0 }
  0x42   :  { %86 = vsyncpa [#allocation19], 0  ;;  %s138_s21 = sshll.u32 %s1298_s15, 4  ;;  %s139_s21 = int_to_ptr.hbm [resolvable:$true] %s138_s21 }
  0x43   :  { %87 = vsyncpa [#allocation22], 0  ;;  %s1186_s22 = smov [#allocation6]   ;;  %s160_s28 = sshll.u32 %s1308_s17, 4  ;;  %s161_s28 = int_to_ptr.hbm [resolvable:$true] %s160_s28 }
  0x44   :  { %s140_s26 = sshll.u32 %s1186_s22, 4  ;;  %s849_s0 = sshra.s32 %s139_s21, 4  ;;  %s141_s26 = int_to_ptr.vmem [resolvable:$true] %s140_s26  ;;  %s850_s0 = int_to_ptr.hbm [resolvable:$true] %s849_s0 }
  0x45   :  { %s851_s24 = scalar_lea.hbm %s850_s0, 1  ;;  %s853_s1 = scalar_lea.hbm %s1298_s15, 1 }
  0x46   :  { %p852_p0 = scmp.ne.s32.totalorder %s850_s0, %s851_s24  ;;  %p854_p1 = scmp.lt.s32.totalorder %s850_s0, %s1298_s15 }
  0x47   :  { %p855_p2 = scmp.lt.s32.totalorder %s853_s1, %s851_s24 }
  0x49   :  { %p856_p3 = por %p855_p2, %p854_p1 }
  0x4b   :  { %p857_p4 = pnand %p856_p3, %p852_p0 }
  0x4d   :  { %860 = shalt.err (!%p857_p4)
}
  0x4e   :  { %143 = dma.hbm_to_vmem [thread:$0]  %s139_s21, 16, %s141_s26, [#allocation7]  }
  0x4f   :  { %s1187_s2 = smov [#allocation9]   ;;  %s184_s10 = sshll.u32 %s1318_s6, 4  ;;  %s185_s10 = int_to_ptr.hbm [resolvable:$true] %s184_s10 }
  0x50   :  { %s162_s7 = sshll.u32 %s1187_s2, 4  ;;  %s873_s11 = sshra.s32 %s161_s28, 4  ;;  %s163_s7 = int_to_ptr.vmem [resolvable:$true] %s162_s7  ;;  %s874_s11 = int_to_ptr.hbm [resolvable:$true] %s873_s11 }
  0x51   :  { %s875_s14 = scalar_lea.hbm %s874_s11, 1  ;;  %s877_s16 = scalar_lea.hbm %s1308_s17, 1 }
  0x52   :  { %p876_p5 = scmp.ne.s32.totalorder %s874_s11, %s875_s14  ;;  %p878_p6 = scmp.lt.s32.totalorder %s874_s11, %s1308_s17 }
  0x53   :  { %p879_p7 = scmp.lt.s32.totalorder %s877_s16, %s875_s14 }
  0x55   :  { %p880_p8 = por %p879_p7, %p878_p6 }
  0x57   :  { %p881_p9 = pnand %p880_p8, %p876_p5 }
  0x59   :  { %884 = shalt.err (!%p881_p9)
}
  0x5a   :  { %165 = dma.hbm_to_vmem [thread:$0]  %s161_s28, 16, %s163_s7, [#allocation10]  }
  0x5b   :  { %s206_s15 = sshll.u32 %s1328_s12, 4  ;;  %s1188_s18 = smov [#allocation12]   ;;  %s207_s15 = int_to_ptr.hbm [resolvable:$true] %s206_s15 }
  0x5c   :  { %s186_s21 = sshll.u32 %s1188_s18, 4  ;;  %s897_s22 = sshra.s32 %s185_s10, 4  ;;  %s187_s21 = int_to_ptr.vmem [resolvable:$true] %s186_s21  ;;  %s898_s22 = int_to_ptr.hbm [resolvable:$true] %s897_s22 }
  0x5d   :  { %s899_s26 = scalar_lea.hbm %s898_s22, 4  ;;  %s901_s0 = scalar_lea.hbm %s1318_s6, 4 }
  0x5e   :  { %p900_p10 = scmp.ne.s32.totalorder %s898_s22, %s899_s26  ;;  %p902_p11 = scmp.lt.s32.totalorder %s898_s22, %s1318_s6 }
  0x5f   :  { %p903_p12 = scmp.lt.s32.totalorder %s901_s0, %s899_s26 }
  0x61   :  { %p904_p13 = por %p903_p12, %p902_p11 }
  0x63   :  { %p905_p0 = pnand %p904_p13, %p900_p10 }
  0x65   :  { %908 = shalt.err (!%p905_p0)
}
  0x66   :  { %189 = dma.hbm_to_vmem [thread:$0]  %s185_s10, 64, %s187_s21, [#allocation13]  }
  0x67   :  { %s1189_s17 = smov [#allocation15]   ;;  %s921_s24 = sshra.s32 %s207_s15, 4  ;;  %s922_s24 = int_to_ptr.hbm [resolvable:$true] %s921_s24 }
  0x68   :  { %s208_s28 = sshll.u32 %s1189_s17, 4  ;;  %s923_s1 = scalar_lea.hbm %s922_s24, 4  ;;  %s209_s28 = int_to_ptr.vmem [resolvable:$true] %s208_s28 }
  0x69   :  { %p924_p1 = scmp.ne.s32.totalorder %s922_s24, %s923_s1  ;;  %s925_s2 = scalar_lea.hbm %s1328_s12, 4 }
  0x6a   :  { %p926_p2 = scmp.lt.s32.totalorder %s922_s24, %s1328_s12  ;;  %p927_p3 = scmp.lt.s32.totalorder %s925_s2, %s923_s1 }
  0x6c   :  { %p928_p4 = por %p927_p3, %p926_p2 }
  0x6e   :  { %p929_p5 = pnand %p928_p4, %p924_p1 }
  0x70   :  { %932 = shalt.err (!%p929_p5)
}
  0x71   :  { %211 = dma.hbm_to_vmem [thread:$0]  %s207_s15, 64, %s209_s28, [#allocation16]  }
  0x72   :  { %s231_s6 = sshll.u32 %s1343_s25, 4  ;;  %s1190_s7 = smov [#allocation18]   ;;  %s232_s6 = int_to_ptr.hbm [resolvable:$true] %s231_s6 }
  0x73   :  { %s233_s10 = sshll.u32 %s1190_s7, 4  ;;  %s127_s11 = sshll.u32 %s1293_s4, 4  ;;  %s234_s10 = int_to_ptr.vmem [resolvable:$true] %s233_s10  ;;  %s128_s11 = int_to_ptr.hbm [resolvable:$true] %s127_s11 }
  0x74   :  { %s945_s14 = sshra.s32 %s232_s6, 4  ;;  %s949_s12 = scalar_lea.hbm %s1343_s25, 32  ;;  %s946_s14 = int_to_ptr.hbm [resolvable:$true] %s945_s14 }
  0x75   :  { %s947_s16 = scalar_lea.hbm %s946_s14, 32  ;;  %p950_p7 = scmp.lt.s32.totalorder %s946_s14, %s1343_s25 }
  0x76   :  { %p948_p6 = scmp.ne.s32.totalorder %s946_s14, %s947_s16  ;;  %p951_p8 = scmp.lt.s32.totalorder %s949_s12, %s947_s16 }
  0x78   :  { %p952_p9 = por %p951_p8, %p950_p7 }
  0x7a   :  { %p953_p10 = pnand %p952_p9, %p948_p6 }
  0x7c   :  { %956 = shalt.err (!%p953_p10)
}
  0x7d   :  { %s1191_s15 = smov 128   ;;  %s1192_s18 = smov 8  }
  0x7e   :  { %239 = dma.hbm_to_vmem [thread:$0]  %s232_s6, 512, %s234_s10, [#allocation19], %s1191_s15, %s1191_s15, %s1192_s18  }
  0x7f   :  { %s1193_s21 = smov [#allocation4]   ;;  %s149_s26 = sshll.u32 %s1303_s23, 4  ;;  %s150_s26 = int_to_ptr.hbm [resolvable:$true] %s149_s26 }
  0x80   :  { %s129_s22 = sshll.u32 %s1193_s21, 4  ;;  %s969_s25 = sshra.s32 %s128_s11, 4  ;;  %s130_s22 = int_to_ptr.vmem [resolvable:$true] %s129_s22  ;;  %s970_s25 = int_to_ptr.hbm [resolvable:$true] %s969_s25 }
  0x81   :  { %s971_s0 = scalar_lea.hbm %s970_s25, 1  ;;  %s973_s17 = scalar_lea.hbm %s1293_s4, 1 }
  0x82   :  { %p972_p11 = scmp.ne.s32.totalorder %s970_s25, %s971_s0  ;;  %p974_p12 = scmp.lt.s32.totalorder %s970_s25, %s1293_s4 }
  0x83   :  { %p975_p13 = scmp.lt.s32.totalorder %s973_s17, %s971_s0 }
  0x85   :  { %p976_p0 = por %p975_p13, %p974_p12 }
  0x87   :  { %p977_p1 = pnand %p976_p0, %p972_p11 }
  0x89   :  { %980 = shalt.err (!%p977_p1)
}
  0x8a   :  { %132 = dma.hbm_to_vmem [thread:$0]  %s128_s11, 16, %s130_s22, [#allocation5]  }
  0x8b   :  { %s171_s28 = sshll.u32 %s1313_s27, 4  ;;  %s1194_s24 = smov [#allocation8]   ;;  %s172_s28 = int_to_ptr.hbm [resolvable:$true] %s171_s28 }
  0x8c   :  { %s151_s1 = sshll.u32 %s1194_s24, 4  ;;  %s993_s2 = sshra.s32 %s150_s26, 4  ;;  %s152_s1 = int_to_ptr.vmem [resolvable:$true] %s151_s1  ;;  %s994_s2 = int_to_ptr.hbm [resolvable:$true] %s993_s2 }
  0x8d   :  { %s995_s6 = scalar_lea.hbm %s994_s2, 1  ;;  %s997_s7 = scalar_lea.hbm %s1303_s23, 1 }
  0x8e   :  { %p996_p2 = scmp.ne.s32.totalorder %s994_s2, %s995_s6  ;;  %p998_p3 = scmp.lt.s32.totalorder %s994_s2, %s1303_s23 }
  0x8f   :  { %p999_p4 = scmp.lt.s32.totalorder %s997_s7, %s995_s6 }
  0x91   :  { %p1000_p5 = por %p999_p4, %p998_p3 }
  0x93   :  { %p1001_p6 = pnand %p1000_p5, %p996_p2 }
  0x95   :  { %1004 = shalt.err (!%p1001_p6)
}
  0x96   :  { %154 = dma.hbm_to_vmem [thread:$0]  %s150_s26, 16, %s152_s1, [#allocation7]  }
  0x97   :  { %s1195_s4 = smov [#allocation11]   ;;  %s195_s11 = sshll.u32 %s1323_s20, 4  ;;  %s196_s11 = int_to_ptr.hbm [resolvable:$true] %s195_s11 }
  0x98   :  { %s173_s10 = sshll.u32 %s1195_s4, 4  ;;  %s1017_s14 = sshra.s32 %s172_s28, 4  ;;  %s174_s10 = int_to_ptr.vmem [resolvable:$true] %s173_s10  ;;  %s1018_s14 = int_to_ptr.hbm [resolvable:$true] %s1017_s14 }
  0x99   :  { %s1019_s16 = scalar_lea.hbm %s1018_s14, 1  ;;  %s1021_s12 = scalar_lea.hbm %s1313_s27, 1 }
  0x9a   :  { %p1020_p7 = scmp.ne.s32.totalorder %s1018_s14, %s1019_s16  ;;  %p1022_p8 = scmp.lt.s32.totalorder %s1018_s14, %s1313_s27 }
  0x9b   :  { %p1023_p9 = scmp.lt.s32.totalorder %s1021_s12, %s1019_s16 }
  0x9d   :  { %p1024_p10 = por %p1023_p9, %p1022_p8 }
  0x9f   :  { %p1025_p11 = pnand %p1024_p10, %p1020_p7 }
  0xa1   :  { %1028 = shalt.err (!%p1025_p11)
}
  0xa2   :  { %176 = dma.hbm_to_vmem [thread:$0]  %s172_s28, 16, %s174_s10, [#allocation10]  }
  0xa3   :  { %s218_s23 = sshll.u32 %s1338_s3, 4  ;;  %s1196_s21 = smov [#allocation14]   ;;  %s1412_s23 = int_to_ptr.hbm [resolvable:$true] %s218_s23 }
  0xa4   :  { %s197_s22 = sshll.u32 %s1196_s21, 4  ;;  %s1041_s26 = sshra.s32 %s196_s11, 4  ;;  %s198_s22 = int_to_ptr.vmem [resolvable:$true] %s197_s22  ;;  %s1042_s26 = int_to_ptr.hbm [resolvable:$true] %s1041_s26 }
  0xa5   :  { %s1043_s25 = scalar_lea.hbm %s1042_s26, 4  ;;  %s1045_s0 = scalar_lea.hbm %s1323_s20, 4 }
  0xa6   :  { %p1044_p12 = scmp.ne.s32.totalorder %s1042_s26, %s1043_s25  ;;  %p1046_p13 = scmp.lt.s32.totalorder %s1042_s26, %s1323_s20 }
  0xa7   :  { %p1047_p0 = scmp.lt.s32.totalorder %s1045_s0, %s1043_s25 }
  0xa9   :  { %p1048_p1 = por %p1047_p0, %p1046_p13 }
  0xab   :  { %p1049_p2 = pnand %p1048_p1, %p1044_p12 }
  0xad   :  { %1052 = shalt.err (!%p1049_p2)
}
  0xae   :  { %200 = dma.hbm_to_vmem [thread:$0]  %s196_s11, 64, %s198_s22, [#allocation13]  }
  0xaf   :  { %s1197_s27 = smov [#allocation17]   ;;  %s245_s28 = sshll.u32 %s1348_s5, 4  ;;  %s246_s28 = int_to_ptr.hbm [resolvable:$true] %s245_s28 }
  0xb0   :  { %s220_s17 = sshll.u32 %s1197_s27, 4  ;;  %s1065_s24 = sshra.s32 %s1412_s23, 4  ;;  %s221_s17 = int_to_ptr.vmem [resolvable:$true] %s220_s17  ;;  %s1066_s24 = int_to_ptr.hbm [resolvable:$true] %s1065_s24 }
  0xb1   :  { %s1067_s1 = scalar_lea.hbm %s1066_s24, 32  ;;  %s1069_s2 = scalar_lea.hbm %s1338_s3, 32 }
  0xb2   :  { %p1068_p3 = scmp.ne.s32.totalorder %s1066_s24, %s1067_s1  ;;  %p1070_p4 = scmp.lt.s32.totalorder %s1066_s24, %s1338_s3 }
  0xb3   :  { %p1071_p5 = scmp.lt.s32.totalorder %s1069_s2, %s1067_s1 }
  0xb5   :  { %p1072_p6 = por %p1071_p5, %p1070_p4 }
  0xb7   :  { %p1073_p7 = pnand %p1072_p6, %p1068_p3 }
  0xb9   :  { %1076 = shalt.err (!%p1073_p7)
}
  0xba   :  { %226 = dma.hbm_to_vmem [thread:$0]  %s1412_s23, 512, %s221_s17, [#allocation16], %s1191_s15, %s1191_s15, %s1192_s18  }
  0xbb   :  { %s256_s20 = sshll.u32 %s1353_s13, 4  ;;  %s1198_s6 = smov [#allocation20]   ;;  %s257_s20 = int_to_ptr.hbm [resolvable:$true] %s256_s20 }
  0xbc   :  { %s247_s7 = sshll.u32 %s1198_s6, 4  ;;  %s1089_s4 = sshra.s32 %s246_s28, 4  ;;  %s248_s7 = int_to_ptr.vmem [resolvable:$true] %s247_s7  ;;  %s1090_s4 = int_to_ptr.hbm [resolvable:$true] %s1089_s4 }
  0xbd   :  { %s1091_s3 = scalar_lea.hbm %s1090_s4, 1  ;;  %s1093_s10 = scalar_lea.hbm %s1348_s5, 1 }
  0xbe   :  { %p1092_p8 = scmp.ne.s32.totalorder %s1090_s4, %s1091_s3  ;;  %p1094_p9 = scmp.lt.s32.totalorder %s1090_s4, %s1348_s5 }
  0xbf   :  { %p1095_p10 = scmp.lt.s32.totalorder %s1093_s10, %s1091_s3 }
  0xc1   :  { %p1096_p11 = por %p1095_p10, %p1094_p9 }
  0xc3   :  { %p1097_p12 = pnand %p1096_p11, %p1092_p8 }
  0xc5   :  { %1100 = shalt.err (!%p1097_p12)
}
  0xc6   :  { %250 = dma.hbm_to_vmem [thread:$0]  %s246_s28, 16, %s248_s7, [#allocation19]  }
  0xc7   :  { %s1199_s11 = smov [#allocation21]   ;;  %s1113_s18 = sshra.s32 %s257_s20, 4  ;;  %s1114_s18 = int_to_ptr.hbm [resolvable:$true] %s1113_s18 }
  0xc8   :  { %s258_s15 = sshll.u32 %s1199_s11, 4  ;;  %s1115_s14 = scalar_lea.hbm %s1114_s18, 1  ;;  %s259_s15 = int_to_ptr.vmem [resolvable:$true] %s258_s15 }
  0xc9   :  { %p1116_p13 = scmp.ne.s32.totalorder %s1114_s18, %s1115_s14  ;;  %s1117_s16 = scalar_lea.hbm %s1353_s13, 1 }
  0xca   :  { %p1118_p0 = scmp.lt.s32.totalorder %s1114_s18, %s1353_s13  ;;  %p1119_p1 = scmp.lt.s32.totalorder %s1117_s16, %s1115_s14 }
  0xcc   :  { %p1120_p2 = por %p1119_p1, %p1118_p0 }
  0xce   :  { %p1121_p3 = pnand %p1120_p2, %p1116_p13 }
  0xd0   :  { %1124 = shalt.err (!%p1121_p3)
}
  0xd1   :  { %261 = dma.hbm_to_vmem [thread:$0]  %s257_s20, 16, %s259_s15, [#allocation22]  }
  0xd2   :  { %1137 = dma.done.wait [#allocation5], 16  }
  0xd3   :  { %1138 = vsyncadd [#allocation5], 4294967280 }
  0xd4   :  { %1139 = dma.done.wait [#allocation7], 32  }
  0xd5   :  { %1140 = vsyncadd [#allocation7], 4294967264 }
  0xd6   :  { %1141 = dma.done.wait [#allocation10], 32  }
  0xd7   :  { %1142 = vsyncadd [#allocation10], 4294967264 }
  0xd8   :  { %1143 = dma.done.wait [#allocation13], 128  }
  0xd9   :  { %1144 = vsyncadd [#allocation13], 4294967168 }
  0xda   :  { %1145 = dma.done.wait [#allocation16], 576  }
  0xdb   :  { %1146 = vsyncadd [#allocation16], 4294966720 }
  0xdc   :  { %1147 = dma.done.wait [#allocation19], 528  }
  0xdd   :  { %1148 = vsyncadd [#allocation19], 4294966768 }
  0xde   :  { %1149 = dma.done.wait [#allocation22], 16  }
  0xdf   :  { %1150 = vsyncadd [#allocation22], 4294967280  ;;  %s1503_s5 = sld [smem:[#allocation35_spill]]  ;;  %vm350_vm0 = vcmask 1043456   ;;  %v400_v2 = vld [vmem:[%s1268_s30] sm:$0xf] }
  0xe0   :  { %s1504_s13 = sld [smem:[#allocation37_spill]]  ;;  %v311_v3 = vld [vmem:[%s1215_s9] sm:$0xff]  ;;  %760 = vmatpush.msk.msra.mxu2 %vm350_vm0, %v400_v2  ;;  %vm346_vm1 = vcmask 31744   ;;  %v830_v16 = vld [vmem:[#allocation9] ss:$0 sm:$0xff]  ;;  %v1200_v19 = vmov -1.0  }
  0xe1   :  { %s1505_s12 = sld [smem:[#allocation39_spill]]  ;;  %v829_v15 = vld [vmem:[#allocation6] ss:$0 sm:$0xff]  ;;  %vm442_vm4 = vcmask 261120   ;;  %v528_v39 = vld [vmem:[#allocation12] sm:$0xf] }
  0xe2   :  { %s1506_s23 = sld [smem:[#allocation38_spill]]  ;;  %v582_v40 = vld [vmem:[#allocation15] sm:$0xf]  ;;  %v529_v41 = vld [vmem:[#allocation14] sm:$0xf]  ;;  %766 = vmatpush.msk.msrb.mxu2 %vm350_vm0, %v528_v39  ;;  %v618_v61 = vld [vmem:[#allocation17 + $0x10] sm:$0xff] }
  0xe3   :  { %s1507_s21 = sld [smem:[#allocation30_spill]]  ;;  %v832_v48 = vld [vmem:[#allocation4] ss:$0 sm:$0xff]  ;;  %v834_v54 = vld [vmem:[#allocation8] ss:$0 sm:$0xff]  ;;  %v619_v59 = vld [vmem:[#allocation17 + $0x18] sm:$0xff] }
  0xe4   :  { %s1508_s22 = sld [smem:[#allocation34_spill]]  ;;  %v835_v56 = vld [vmem:[#allocation11] ss:$0 sm:$0xff]  ;;  %v651_v60 = vld [vmem:[#allocation18 + $0x18] sm:$0xff]  ;;  %v617_v63 = vld [vmem:[#allocation17 + $0x8] sm:$0xff] }
  0xe5   :  { %s1509_s26 = sld [smem:[#allocation36_spill]]  ;;  %v825_v4 = vld [vmem:[%s1503_s5] ss:$0 sm:$0xff]  ;;  %v650_v62 = vld [vmem:[#allocation18 + $0x10] sm:$0xff]  ;;  %v616_v1 = vld [vmem:[#allocation17] sm:$0xff] }
  0xe6   :  { %s1510_s25 = sld [smem:[#allocation31_spill]]  ;;  %v826_v5 = vld [vmem:[%s1504_s13] ss:$0 sm:$0xff]  ;;  %v329_v9 = vmul.f32 %v825_v4, %v311_v3  ;;  %v648_v2 = vld [vmem:[#allocation18] sm:$0xff] }
  0xe7   :  { %v345_v6 = vld [vmem:[%s1505_s12] sm:$0xf]  ;;  %s1511_s0 = sld [smem:[#allocation45_spill]] }
  0xe8   :  { %v344_v7 = vld [vmem:[%s1506_s23] sm:$0xf]  ;;  %756 = vmatpush.msk.msra.mxu0 %vm350_vm0, %v345_v6  ;;  %v1442_v13 = vadd.f32 %v826_v5, %v329_v9  ;;  %s1512_s9 = sld [smem:[#allocation41_spill]] }
  0xe9   :  { %v310_v8 = vld [vmem:[%s1507_s21] sm:$0xff]  ;;  %758 = vmatpush.msk.msra.mxu1 %vm350_vm0, %v344_v7  ;;  %s1513_s30 = sld [smem:[#allocation42_spill]] }
  0xea   :  { %v827_v10 = vld [vmem:[%s1508_s22] ss:$0 sm:$0xff]  ;;  %vm342_vm2 = vcmp.gt.f32.partialorder %v1442_v13, 0.0  ;;  %s1514_s27 = sld [smem:[#allocation40_spill]] }
  0xeb   :  { %v828_v11 = vld [vmem:[%s1509_s26] ss:$0 sm:$0xff]  ;;  %v319_v14 = vmul.f32 %v827_v10, %v310_v8  ;;  %v343_v20 = vsel %vm342_vm2, 1.0, %v1200_v19  ;;  %s1516_s17 = sld [smem:[#allocation32_spill]]  ;;  %764 = vmatpush.msk.msrb.mxu1 %vm350_vm0, %v529_v41 }
  0xec   :  { %v312_v12 = vld [vmem:[%s1510_s25] sm:$0xff]  ;;  %761 = vmatmul.msk.f32.vlgmr.msra.gmra.mxu2 %vm346_vm1, %v343_v20  ;;  %s1517_s28 = sld [smem:[#allocation44_spill]] }
  0xed   :  { %759 = vmatmul.msk.f32.vlgmr.msra.gmra.mxu1 %vm346_vm1, %v312_v12  ;;  %v324_v17 = vadd.f32 %v828_v11, %v319_v14  ;;  %v507_v18 = vmul.f32 %v829_v15, %v312_v12  ;;  %v649_v0 = vld [vmem:[#allocation18 + $0x8] sm:$0xff]  ;;  %v838_v11 = vld [vmem:[#allocation20] ss:$0 sm:$0xff]  ;;  %s1519_s24 = sld [smem:[#allocation33_spill]] }
  0xee   :  { %v437_v23 = vld [vmem:[%s1512_s9 + $0x18] sm:$0xff]  ;;  %v436_v25 = vld [vmem:[%s1512_s9 + $0x10] sm:$0xff]  ;;  %v435_v27 = vld [vmem:[%s1512_s9 + $0x8] sm:$0xff]  ;;  %668 = vmatpush.msra.mxu1 %v651_v60 }
  0xef   :  { %vm340_vm3 = vcmp.gt.f32.partialorder %v324_v17, 0.0  ;;  %684 = vst.msk [vmem:[%s1511_s0] sm:$0xff] %vm346_vm1, %v324_v17  ;;  %v512_v21 = vadd.f32 %v830_v16, %v507_v18  ;;  %v470_v24 = vld [vmem:[%s1513_s30 + $0x18] sm:$0xff]  ;;  %458 = vmatpush.msra.mxu3 %v437_v23  ;;  %v469_v26 = vld [vmem:[%s1513_s30 + $0x10] sm:$0xff]  ;;  %v468_v28 = vld [vmem:[%s1513_s30 + $0x8] sm:$0xff] }
  0xf0   :  { %v341_v22 = vsel %vm340_vm3, 1.0, %v1200_v19  ;;  %487 = vmatpush.msrb.mxu0 %v470_v24  ;;  %v434_v29 = vld [vmem:[%s1512_s9] sm:$0xff]  ;;  %669 = vmatpush.msra.mxu1 %v650_v62  ;;  %v839_v18 = vld [vmem:[#allocation21] ss:$0 sm:$0xff]  ;;  %v1201_v24 = vmov 0  }
  0xf1   :  { %757 = vmatmul.msk.f32.vlgmr.msra.gmra.mxu0 %vm346_vm1, %v341_v22  ;;  %686 = vst.msk [vmem:[%s1368_s8] sm:$0xff] %vm346_vm1, %v512_v21  ;;  %459 = vmatpush.msra.mxu3 %v436_v25  ;;  %v467_v30 = vld [vmem:[%s1513_s30] sm:$0xff]  ;;  %s1515_s8 = sld [smem:[#allocation43_spill]] }
  0xf2   :  { %488 = vmatpush.msrb.mxu0 %v469_v26  ;;  %v831_v34 = vld [vmem:[%s1514_s27] ss:$0 sm:$0xff]  ;;  %670 = vmatpush.msra.mxu1 %v649_v0 }
  0xf3   :  { %460 = vmatpush.msra.mxu3 %v435_v27  ;;  %v313_v50 = vld [vmem:[%s1516_s17] sm:$0xff]  ;;  %823 = vset.pattern.permute.xlu1 %v1201_v24 }
  0xf4   :  { %489 = vmatpush.msrb.mxu0 %v468_v28  ;;  %767 = vmatmul.msk.f32.vlgmr.msrb.gmra.mxu2 %vm346_vm1, %v324_v17  ;;  %v837_v6 = vld [vmem:[%s1517_s28] ss:$0 sm:$0xff] }
  0xf5   :  { %461 = vmatpush.msra.mxu3 %v434_v29  ;;  %765 = vmatmul.msk.f32.vlgmr.msrb.gmra.mxu1 %vm346_vm1, %v512_v21  ;;  %v836_v25 = vld [vmem:[#allocation2] ss:$0 sm:$0xff] }
  0xf6   :  { %490 = vmatpush.msrb.mxu0 %v467_v30  ;;  %671 = vmatpush.msra.mxu1 %v648_v2  ;;  %v314_v26 = vld [vmem:[%s1519_s24] sm:$0xff] }
  0xf7   :  { %768 = vmatpush.msk.msrb.mxu3 %vm350_vm0, %v582_v40  ;;  %v833_v42 = vld [vmem:[%s1515_s8] ss:$0 sm:$0xff]  ;;  %824 = vset.pattern.permute.xlu0 %v1201_v24  ;;  %v339_v27 = vsub.f32 %v314_v26, %v836_v25  ;;  %v840_v30 = vld [vmem:[#allocation3] ss:$0 sm:$0xff] }
  0xf8   :  { %639 = vmatpush.msra.mxu0 %v619_v59 }
  0xfa   :  { %640 = vmatpush.msra.mxu0 %v618_v61 }
  0xfc   :  { %641 = vmatpush.msra.mxu0 %v617_v63 }
  0xfe   :  { %642 = vmatpush.msra.mxu0 %v616_v1 }
 0x16a   :  { %v397_v31 = vpop.f32.mrf.mxu1 }
 0x16e   :  { %v371_v32 = vpop.f32.mrf.mxu0 }
 0x16f   :  { %v398_v33 = vadd.f32 %v397_v31, %v371_v32  ;;  %v424_v35 = vpop.f32.mrf.mxu2 }
 0x171   :  { %v427_v36 = vadd.f32 %v424_v35, %v398_v33 }
 0x172   :  { %v553_v3 = vpop.f32.mrf.mxu1 }
 0x173   :  { %v432_v37 = vadd.f32 %v831_v34, %v427_v36 }
 0x175   :  { %v433_v38 = vmax.f32 %v432_v37, 0.0 }
 0x177   :  { %762 = vmatmul.msk.f32.vlgmr.msra.gmra.mxu3 %vm442_vm4, %v433_v38  ;;  %763 = vmatmul.msk.f32.vlgmr.msrb.gmra.mxu0 %vm442_vm4, %v433_v38  ;;  %v579_v4 = vpop.f32.mrf.mxu2 }
 0x178   :  { %v580_v5 = vadd.f32 %v579_v4, %v553_v3 }
 0x1f4   :  { %v492_v49 = vpop.f32.mrf.mxu0 }
 0x1f5   :  { %v493_v52 = vadd.f32 %v832_v48, %v492_v49 }
 0x1fa   :  { %v463_v43 = vpop.f32.mrf.mxu3 }
 0x1fb   :  { %v464_v44 = vadd.f32 %v833_v42, %v463_v43 }
 0x1fd   :  { %841 = vtanh.f32 %v464_v44 }
 0x203   :  { %v842_v45 = vpop.eup %841 }
 0x204   :  { %v495_v46 = vmul.f32 1.442695, %v842_v45  ;;  %v499_v47 = vsel %vm346_vm1, %v842_v45, 0.0 }
 0x205   :  { %500 = vadd.xlane.f32.xlu0 %v499_v47 }
 0x206   :  { %843 = vpow2.f32 %v495_v46 }
 0x20c   :  { %v844_v51 = vpop.eup %843 }
 0x20d   :  { %v497_v53 = vmul.f32 %v844_v51, %v313_v50 }
 0x20f   :  { %v498_v55 = vadd.f32 %v497_v53, %v493_v52 }
 0x211   :  { %v517_v57 = vmul.f32 %v834_v54, %v498_v55 }
 0x213   :  { %v522_v58 = vadd.f32 %v835_v56, %v517_v57 }
 0x215   :  { %769 = vmatmul.msk.f32.vlgmr.msrb.gmra.mxu3 %vm346_vm1, %v522_v58  ;;  %687 = vst.msk [vmem:[%s1373_s29] sm:$0xff] %vm346_vm1, %v522_v58  ;;  %s1518_s29 = sld [smem:[#allocation46_spill]] }
 0x278   :  { %v501_v28 = vpop.xlane.xlu0 %500 }
 0x279   :  { %v502_v29 = vsub.f32 %v339_v27, %v501_v28 }
 0x27b   :  { %v527_v31 = vsub.f32 %v502_v29, %v840_v30 }
 0x298   :  { %v606_v7 = vpop.f32.mrf.mxu3 }
 0x299   :  { %v609_v8 = vadd.f32 %v606_v7, %v580_v5 }
 0x29b   :  { %v614_v9 = vadd.f32 %v837_v6, %v609_v8 }
 0x29d   :  { %v615_v10 = vmax.f32 %v614_v9, 0.0 }
 0x29f   :  { %770 = vmatmul.msk.f32.vlgmr.msra.gmra.mxu0 %vm442_vm4, %v615_v10  ;;  %771 = vmatmul.msk.f32.vlgmr.msra.gmra.mxu1 %vm442_vm4, %v615_v10 }
 0x31c   :  { %v644_v12 = vpop.f32.mrf.mxu0  ;;  %v673_v19 = vpop.f32.mrf.mxu1 }
 0x31d   :  { %v645_v14 = vadd.f32 %v838_v11, %v644_v12  ;;  %v674_v21 = vadd.f32 %v839_v18, %v673_v19 }
 0x31f   :  { %845 = vtanh.f32 %v645_v14 }
 0x325   :  { %v846_v15 = vpop.eup %845 }
 0x326   :  { %v676_v16 = vmul.f32 1.442695, %v846_v15  ;;  %v680_v17 = vsel %vm346_vm1, %v846_v15, 0.0 }
 0x327   :  { %681 = vadd.xlane.f32.xlu0 %v680_v17 }
 0x328   :  { %847 = vpow2.f32 %v676_v16 }
 0x32e   :  { %v848_v20 = vpop.eup %847 }
 0x32f   :  { %v678_v22 = vmul.f32 %v848_v20, %v1442_v13 }
 0x331   :  { %v679_v23 = vadd.f32 %v678_v22, %v674_v21 }
 0x333   :  { %685 = vst.msk [vmem:[%s1518_s29] sm:$0xff] %vm346_vm1, %v679_v23 }
 0x39a   :  { %v682_v32 = vpop.xlane.xlu0 %681 }
 0x39b   :  { %v683_v33 = vsub.f32 %v527_v31, %v682_v32 }
 0x39d   :  { %690 = vperm.xlu1 %823, %v683_v33  }
 0x40f   :  { %v691_v34 = vpop.permute.xlu1 %690 }
 0x410   :  { %693 = vst [vmem:[%s1378_s19] sm:$0xff] %v691_v34 }
 0x411   :  { %714 = vsyncpa [#allocation5], 1 }
 0x412   :  { %715 = vsyncpa [#allocation7], 1 }
 0x413   :  { %716 = vsyncpa [#allocation10], 1 }
 0x414   :  { %717 = vsyncpa [#allocation13], 1 }
 0x415   :  { %718 = vsyncpa [#allocation16], 1 }
 0x416   :  { %719 = vsyncpa [#allocation19], 1 }
 0x417   :  { %720 = vsyncpa [#allocation22], 1 }

</bundles_post_ra>
